<compile_context>
chip_gen: v6e
topology: v6e:2x2x1
jax: 0.10.0
libtpu: 0.0.40
codegen_flags: <defaults>
</compile_context>

<pallas_src>
import jax
import jax.numpy as jnp
from jax import lax
from jax.experimental import pallas as pl
from jax.experimental.pallas import tpu as pltpu


# Contract the minor (feature) dims of both operands: (m, k) x (n, k) -> (m, n).
_NT_DIMS = (((1,), (1,)), ((), ()))


def _leaky_relu(x, negative_slope=0.01):
    # Matches torch.nn.functional.leaky_relu's default slope.
    return jnp.where(x > 0, x, negative_slope * x)


def unn_kernel(x_ref, w1_ref, b1_ref, w2_ref, b2_ref, w3_ref, b3_ref, out_ref):
    # x tile: (tm, u_rom), row-major exactly as stored in HBM.
    x = x_ref[...]

    # Layer 1: h1^T = W1 @ x^T + b1 -> (h, tm).  NT dot contracts the feature dim
    # of both operands; the batch lands in the lane dim (dense vregs from here on).
    h1t = lax.dot_general(w1_ref[...], x, _NT_DIMS,
                          preferred_element_type=jnp.float32)
    h1t = _leaky_relu(h1t + b1_ref[...])

    # Layer 2: h2^T = W2 @ h1^T + b2 -> (h, tm).  Plain NN matmul.
    h2t = jnp.dot(w2_ref[...], h1t, preferred_element_type=jnp.float32)
    h2t = _leaky_relu(h2t + b2_ref[...])

    # Layer 3: out^T = W3 @ h2^T + b3 -> (u_dim, tm), no activation.
    out_t = jnp.dot(w3_ref[...], h2t, preferred_element_type=jnp.float32)
    out_t = out_t + b3_ref[...]

    # Single layout flip back to the row-major (tm, u_dim) HBM layout; runs on the
    # XLU transpose unit, off the VPU/MXU critical path.
    out_ref[...] = out_t.T.astype(out_ref.dtype)


def _round_up(x, m):
    return ((x + m - 1) // m) * m


def _choose_tm(batch, tm_cap):
    """Rows per batch tile.

    * multiple of 128 so every in-kernel lane dimension (= batch) is 128-aligned.
    * aims for >= 4 grid steps so the "parallel" batch axis gives each of v7x's
      two TensorCores at least 2 tiles (harmless on v5e/v6e).
    * capped (default 2048): lane-padded VMEM footprint ~6 MiB, safe under v5e's
      16 MiB scoped-VMEM default.  On v6e with very large batches tm_cap can be
      raised up to ~8192 within the 32 MiB vmem limit set below.
    """
    tm_cap = max(128, (int(tm_cap) // 128) * 128)
    tm = _round_up(max(1, (batch + 3) // 4), 128)
    return max(128, min(tm, tm_cap))


def prepare_params(params):
    """One-time conversion from PyTorch-convention params to kernel layout.

    Weights stay in the PyTorch (out, in) layout -- the transposed
    (batch-in-lanes) kernel consumes them directly, so there is no transpose at
    all.  Biases become (out, 1) columns so they broadcast along the lane
    (batch) dimension inside the kernel.
    """
    f32 = jnp.float32
    return {
        "w1": jnp.asarray(params["w1"], f32),                  # (h, u_rom)
        "b1": jnp.asarray(params["b1"], f32).reshape(-1, 1),   # (h, 1)
        "w2": jnp.asarray(params["w2"], f32),                  # (h, h)
        "b2": jnp.asarray(params["b2"], f32).reshape(-1, 1),   # (h, 1)
        "w3": jnp.asarray(params["w3"], f32),                  # (u_dim, h)
        "b3": jnp.asarray(params["b3"], f32).reshape(-1, 1),   # (u_dim, 1)
    }


def unn_forward(u_in, kparams, *, tm_cap=2048):
    """u_in: (B, u_rom) float32 -> (B, u_dim) float32."""
    B, u_rom = u_in.shape
    u_dim = kparams["w3"].shape[0]

    tm = _choose_tm(B, tm_cap)

    # Tiny batches (< one tile): pad up to a single 128-aligned tile (negligible
    # traffic).  Large batches are NOT padded: grid = cdiv(B, tm) and Pallas
    # clamps the ragged last block (OOB rows compute garbage that is dropped on
    # write; rows are independent through all three layers).
    rows = B
    if B < tm:
        u_in = jnp.pad(u_in, ((0, tm - B), (0, 0)))
        rows = tm

    grid = (pl.cdiv(rows, tm),)

    # Weights/biases: full-array blocks with a constant index map -> DMA'd once,
    # resident in VMEM across all grid steps (a few KiB total).
    resident = lambda a: pl.BlockSpec(a.shape, lambda i: (0,) * a.ndim)

    out = pl.pallas_call(
        unn_kernel,
        out_shape=jax.ShapeDtypeStruct((rows, u_dim), u_in.dtype),
        grid=grid,
        in_specs=[
            pl.BlockSpec((tm, u_rom), lambda i: (i, 0)),   # streamed x tile
            resident(kparams["w1"]), resident(kparams["b1"]),
            resident(kparams["w2"]), resident(kparams["b2"]),
            resident(kparams["w3"]), resident(kparams["b3"]),
        ],
        out_specs=pl.BlockSpec((tm, u_dim), lambda i: (i, 0)),
        compiler_params=pltpu.CompilerParams(
            dimension_semantics=("parallel",),   # megacore sharding on v7x
            vmem_limit_bytes=32 * 1024 * 1024,   # headroom for tm_cap up to ~8192
        ),
    )(u_in, kparams["w1"], kparams["b1"], kparams["w2"], kparams["b2"],
      kparams["w3"], kparams["b3"])

    return out[:B] if rows != B else out


def init_unn_params(key, u_dim, u_rom):
    """Deterministic init mirroring the PyTorch module's shapes.
    Weights use kaiming-uniform-style bounds, biases uniform(-1/sqrt(fan_in), ...)."""
    h = (u_dim + u_rom) // 2
    ks = jax.random.split(key, 6)

    def kaiming_uniform(k, out_f, in_f):
        bound = jnp.sqrt(6.0 / in_f)
        return jax.random.uniform(k, (out_f, in_f), jnp.float32, -bound, bound)

    def bias_init(k, out_f, in_f):
        bound = 1.0 / jnp.sqrt(in_f)
        return jax.random.uniform(k, (out_f,), jnp.float32, -bound, bound)

    return {
        "w1": kaiming_uniform(ks[0], h, u_rom),
        "b1": bias_init(ks[1], h, u_rom),
        "w2": kaiming_uniform(ks[2], h, h),
        "b2": bias_init(ks[3], h, h),
        "w3": kaiming_uniform(ks[4], u_dim, h),
        "b3": bias_init(ks[5], u_dim, h),
    }


if __name__ == "__main__":
    u_dim, u_rom = 32, 16
    key = jax.random.PRNGKey(0)
    pkey, xkey1, xkey2 = jax.random.split(key, 3)

    params = init_unn_params(pkey, u_dim, u_rom)
    kparams = prepare_params(params)  # one-time layout conversion

    # Reference in plain JAX (same math as the PyTorch forward).
    def ref(x, p):
        h1 = x @ p["w1"].T + p["b1"]
        h1 = jnp.where(h1 > 0, h1, 0.01 * h1)
        h2 = h1 @ p["w2"].T + p["b2"]
        h2 = jnp.where(h2 > 0, h2, 0.01 * h2)
        return h2 @ p["w3"].T + p["b3"]

    # Small batch: single (padded) tile path.
    x_small = jax.random.normal(xkey1, (20, u_rom), jnp.float32)
    out_small = jax.block_until_ready(unn_forward(x_small, kparams))
    assert out_small.shape == (20, u_dim)
    assert jnp.allclose(out_small, ref(x_small, params), atol=1e-4, rtol=1e-4)

    # Larger batch: multi-tile grid (3 steps) with a ragged, un-padded last block.
    x_big = jax.random.normal(xkey2, (300, u_rom), jnp.float32)
    out_big = jax.block_until_ready(unn_forward(x_big, kparams))
    assert out_big.shape == (300, u_dim)
    assert jnp.allclose(out_big, ref(x_big, params), atol=1e-4, rtol=1e-4)

    print("KERNEL_OK")
</pallas_src>

<mosaic_0001>
module attributes {stable_mosaic.version = 11 : i64} {
  func.func @unn_kernel(%arg0: i32, %arg1: memref<128x16xf32, #tpu.memory_space<vmem>>, %arg2: memref<24x16xf32, #tpu.memory_space<vmem>>, %arg3: memref<24x1xf32, #tpu.memory_space<vmem>>, %arg4: memref<24x24xf32, #tpu.memory_space<vmem>>, %arg5: memref<24x1xf32, #tpu.memory_space<vmem>>, %arg6: memref<32x24xf32, #tpu.memory_space<vmem>>, %arg7: memref<32x1xf32, #tpu.memory_space<vmem>>, %arg8: memref<128x32xf32, #tpu.memory_space<vmem>>) attributes {dimension_semantics = [#tpu.dimension_semantics<parallel>], iteration_bounds = array<i64: 1>, scalar_prefetch = 0 : i64, scratch_operands = 0 : i64, tpu.core_type = #tpu.core_type<tc>, window_params = [{transform_indices = @transform_0, window_bounds = array<i64: 128, 16>}, {pipeline_mode = #tpu.pipeline_mode<synchronous>, transform_indices = @transform_1, window_bounds = array<i64: 24, 16>}, {pipeline_mode = #tpu.pipeline_mode<synchronous>, transform_indices = @transform_2, window_bounds = array<i64: 24, 1>}, {pipeline_mode = #tpu.pipeline_mode<synchronous>, transform_indices = @transform_3, window_bounds = array<i64: 24, 24>}, {pipeline_mode = #tpu.pipeline_mode<synchronous>, transform_indices = @transform_4, window_bounds = array<i64: 24, 1>}, {pipeline_mode = #tpu.pipeline_mode<synchronous>, transform_indices = @transform_5, window_bounds = array<i64: 32, 24>}, {pipeline_mode = #tpu.pipeline_mode<synchronous>, transform_indices = @transform_6, window_bounds = array<i64: 32, 1>}, {transform_indices = @transform_7, window_bounds = array<i64: 128, 32>}]} {
    %c0 = arith.constant 0 : index
    %c0_0 = arith.constant 0 : index
    %0 = vector.load %arg1[%c0, %c0_0] : memref<128x16xf32, #tpu.memory_space<vmem>>, vector<128x16xf32>
    %c0_1 = arith.constant 0 : index
    %c0_2 = arith.constant 0 : index
    %1 = vector.load %arg2[%c0_1, %c0_2] : memref<24x16xf32, #tpu.memory_space<vmem>>, vector<24x16xf32>
    %cst = arith.constant dense<0.000000e+00> : vector<24x128xf32>
    %2 = tpu.matmul %1, %0, %cst {dimension_numbers = #tpu.dot_dimension_numbers<[1], [1], [0], [0], [0, 0, 1, 0], [], []>} : vector<24x16xf32>, vector<128x16xf32>, vector<24x128xf32> -> vector<24x128xf32>
    %c0_3 = arith.constant 0 : index
    %c0_4 = arith.constant 0 : index
    %3 = vector.load %arg3[%c0_3, %c0_4] : memref<24x1xf32, #tpu.memory_space<vmem>>, vector<24x1xf32>
    %4 = vector.broadcast %3 : vector<24x1xf32> to vector<24x128xf32>
    %5 = arith.addf %2, %4 : vector<24x128xf32>
    %cst_5 = arith.constant 0.000000e+00 : f32
    %6 = vector.broadcast %cst_5 : f32 to vector<24x128xf32>
    %7 = arith.cmpf ogt, %5, %6 : vector<24x128xf32>
    %cst_6 = arith.constant 0.00999999977 : f32
    %8 = vector.broadcast %cst_6 : f32 to vector<24x128xf32>
    %9 = arith.mulf %8, %5 : vector<24x128xf32>
    %10 = arith.select %7, %5, %9 : vector<24x128xi1>, vector<24x128xf32>
    %c0_7 = arith.constant 0 : index
    %c0_8 = arith.constant 0 : index
    %11 = vector.load %arg4[%c0_7, %c0_8] : memref<24x24xf32, #tpu.memory_space<vmem>>, vector<24x24xf32>
    %cst_9 = arith.constant dense<0.000000e+00> : vector<24x128xf32>
    %12 = tpu.matmul %11, %10, %cst_9 {dimension_numbers = #tpu.dot_dimension_numbers<[1], [0], [0], [1], [0, 0, 1, 1], [], []>} : vector<24x24xf32>, vector<24x128xf32>, vector<24x128xf32> -> vector<24x128xf32>
    %c0_10 = arith.constant 0 : index
    %c0_11 = arith.constant 0 : index
    %13 = vector.load %arg5[%c0_10, %c0_11] : memref<24x1xf32, #tpu.memory_space<vmem>>, vector<24x1xf32>
    %14 = vector.broadcast %13 : vector<24x1xf32> to vector<24x128xf32>
    %15 = arith.addf %12, %14 : vector<24x128xf32>
    %cst_12 = arith.constant 0.000000e+00 : f32
    %16 = vector.broadcast %cst_12 : f32 to vector<24x128xf32>
    %17 = arith.cmpf ogt, %15, %16 : vector<24x128xf32>
    %cst_13 = arith.constant 0.00999999977 : f32
    %18 = vector.broadcast %cst_13 : f32 to vector<24x128xf32>
    %19 = arith.mulf %18, %15 : vector<24x128xf32>
    %20 = arith.select %17, %15, %19 : vector<24x128xi1>, vector<24x128xf32>
    %c0_14 = arith.constant 0 : index
    %c0_15 = arith.constant 0 : index
    %21 = vector.load %arg6[%c0_14, %c0_15] : memref<32x24xf32, #tpu.memory_space<vmem>>, vector<32x24xf32>
    %cst_16 = arith.constant dense<0.000000e+00> : vector<32x128xf32>
    %22 = tpu.matmul %21, %20, %cst_16 {dimension_numbers = #tpu.dot_dimension_numbers<[1], [0], [0], [1], [0, 0, 1, 1], [], []>} : vector<32x24xf32>, vector<24x128xf32>, vector<32x128xf32> -> vector<32x128xf32>
    %c0_17 = arith.constant 0 : index
    %c0_18 = arith.constant 0 : index
    %23 = vector.load %arg7[%c0_17, %c0_18] : memref<32x1xf32, #tpu.memory_space<vmem>>, vector<32x1xf32>
    %24 = vector.broadcast %23 : vector<32x1xf32> to vector<32x128xf32>
    %25 = arith.addf %22, %24 : vector<32x128xf32>
    %26 = tpu.transpose %25, [1, 0] : vector<32x128xf32> -> vector<128x32xf32>
    %c0_19 = arith.constant 0 : index
    %c0_20 = arith.constant 0 : index
    %27 = vector.load %arg8[%c0_19, %c0_20] : memref<128x32xf32, #tpu.memory_space<vmem>>, vector<128x32xf32>
    tpu.vector_store %arg8[%c0_19, %c0_20], %26 {strides = array<i32>} : memref<128x32xf32, #tpu.memory_space<vmem>>, vector<128x32xf32>,
    return
  }
  func.func @transform_0(%arg0: i32) -> (i32, i32) {
    %c0_i32 = arith.constant 0 : i32
    %c0_i32_0 = arith.constant 0 : i32
    return %arg0, %c0_i32 : i32, i32
  }
  func.func @transform_1(%arg0: i32) -> (i32, i32) {
    %c0_i32 = arith.constant 0 : i32
    %c0_i32_0 = arith.constant 0 : i32
    %c0_i32_1 = arith.constant 0 : i32
    return %c0_i32, %c0_i32_0 : i32, i32
  }
  func.func @transform_2(%arg0: i32) -> (i32, i32) {
    %c0_i32 = arith.constant 0 : i32
    %c0_i32_0 = arith.constant 0 : i32
    %c0_i32_1 = arith.constant 0 : i32
    return %c0_i32, %c0_i32_0 : i32, i32
  }
  func.func @transform_3(%arg0: i32) -> (i32, i32) {
    %c0_i32 = arith.constant 0 : i32
    %c0_i32_0 = arith.constant 0 : i32
    %c0_i32_1 = arith.constant 0 : i32
    return %c0_i32, %c0_i32_0 : i32, i32
  }
  func.func @transform_4(%arg0: i32) -> (i32, i32) {
    %c0_i32 = arith.constant 0 : i32
    %c0_i32_0 = arith.constant 0 : i32
    %c0_i32_1 = arith.constant 0 : i32
    return %c0_i32, %c0_i32_0 : i32, i32
  }
  func.func @transform_5(%arg0: i32) -> (i32, i32) {
    %c0_i32 = arith.constant 0 : i32
    %c0_i32_0 = arith.constant 0 : i32
    %c0_i32_1 = arith.constant 0 : i32
    return %c0_i32, %c0_i32_0 : i32, i32
  }
  func.func @transform_6(%arg0: i32) -> (i32, i32) {
    %c0_i32 = arith.constant 0 : i32
    %c0_i32_0 = arith.constant 0 : i32
    %c0_i32_1 = arith.constant 0 : i32
    return %c0_i32, %c0_i32_0 : i32, i32
  }
  func.func @transform_7(%arg0: i32) -> (i32, i32) {
    %c0_i32 = arith.constant 0 : i32
    %c0_i32_0 = arith.constant 0 : i32
    return %arg0, %c0_i32 : i32, i32
  }
}

</mosaic_0001>

<bundles_post_ra>
// kernel: tpu_custom_call.1
= control target key start
LH: loop header
LB: loop body
LE: loop exit
PB: predicated region body
PF: predicated region fallthrough
CT: control target
= control target key end

     0   :  { %vm63_vm0 = vcmask 130048   ;;  %v639_v0 = vmov 0.0   ;;  %vm640_vm1 = vmmov 0   ;;  %v641_v2 = vmov 0   ;;  %s911_s0 = inlined_call_operand.vmem [shape: f32[128,16], index: 0, kind: input, shape index: {}]   ;;  %s912_s2 = inlined_call_operand.vmem [shape: f32[24,1], index: 2, kind: input, shape index: {}]   ;;  %s913_s4 = inlined_call_operand.vmem [shape: f32[24,1], index: 4, kind: input, shape index: {}]   ;;  %s914_s6 = inlined_call_operand.vmem [shape: f32[32,1], index: 6, kind: input, shape index: {}]   ;;  %s915_s1 = inlined_call_operand.vmem [shape: f32[24,16], index: 1, kind: input, shape index: {}]   ;;  %s916_s3 = inlined_call_operand.vmem [shape: f32[24,24], index: 3, kind: input, shape index: {}]   ;;  %s917_s5 = inlined_call_operand.vmem [shape: f32[32,24], index: 5, kind: input, shape index: {}]   ;;  %s918_s7 = inlined_call_operand.vmem [shape: f32[128,32], index: 7, kind: output, shape index: {}]  }
   0x1   :  { %566 = vmatprep.subr.mxu0 %v639_v0  ;;  %v41_v1 = vld [vmem:[%s911_s0 + $0x78] sm:$0xff]  ;;  %598 = vmatprep.mubr.msk.f32.mxu0 %vm640_vm1, %v639_v0  ;;  %v40_v3 = vld [vmem:[%s911_s0 + $0x70] sm:$0xff]  ;;  %v39_v4 = vld [vmem:[%s911_s0 + $0x68] sm:$0xff]  ;;  %vm231_vm5 = vcmask 195584   ;;  %vm487_vm9 = vcmask 261120  }
   0x2   :  { %567 = vmatpush3.xpose.msk.msra.mxu0 %vm63_vm0, %v41_v1  ;;  %637 = vset.pattern.permute.xlu0 %v641_v2  ;;  %v47_v5 = vld [vmem:[%s912_s2 + $0x10] sm:$0xff]  ;;  %v45_v6 = vld [vmem:[%s912_s2] sm:$0xff]  ;;  %v46_v7 = vld [vmem:[%s912_s2 + $0x8] sm:$0xff] }
   0x3   :  { %568 = vmatprep.subr.mxu0 %v639_v0  ;;  %638 = vset.pattern.permute.xlu1 %v641_v2  ;;  %v215_v8 = vld [vmem:[%s913_s4 + $0x10] sm:$0xff]  ;;  %v38_v9 = vld [vmem:[%s911_s0 + $0x60] sm:$0xff]  ;;  %v214_v10 = vld [vmem:[%s913_s4 + $0x8] sm:$0xff] }
   0x4   :  { %607 = vmatprep.subr.mxu1 %v639_v0  ;;  %613 = vmatprep.mubr.msk.f32.mxu1 %vm640_vm1, %v639_v0  ;;  %v213_v11 = vld [vmem:[%s913_s4] sm:$0xff]  ;;  %v37_v12 = vld [vmem:[%s911_s0 + $0x58] sm:$0xff]  ;;  %v335_v14 = vld [vmem:[%s914_s6 + $0x8] sm:$0xff] }
   0x5   :  { %60 = vperm.xlu0 %637, %v47_v5   ;;  %50 = vperm.xlu1 %638, %v45_v6   ;;  %v334_v13 = vld [vmem:[%s914_s6] sm:$0xff]  ;;  %v36_v15 = vld [vmem:[%s911_s0 + $0x50] sm:$0xff]  ;;  %v337_v17 = vld [vmem:[%s914_s6 + $0x18] sm:$0xff] }
   0x6   :  { %569 = vmatpush3.xpose.msk.msra.mxu0 %vm63_vm0, %v40_v3  ;;  %v336_v16 = vld [vmem:[%s914_s6 + $0x10] sm:$0xff]  ;;  %v35_v18 = vld [vmem:[%s911_s0 + $0x48] sm:$0xff]  ;;  %v34_v19 = vld [vmem:[%s911_s0 + $0x40] sm:$0xff] }
   0x7   :  { %570 = vmatprep.subr.mxu0 %v639_v0  ;;  %v33_v20 = vld [vmem:[%s911_s0 + $0x38] sm:$0xff]  ;;  %v32_v21 = vld [vmem:[%s911_s0 + $0x30] sm:$0xff]  ;;  %v31_v22 = vld [vmem:[%s911_s0 + $0x28] sm:$0xff] }
   0x8   :  { %v30_v23 = vld [vmem:[%s911_s0 + $0x20] sm:$0xff]  ;;  %v29_v24 = vld [vmem:[%s911_s0 + $0x18] sm:$0xff]  ;;  %v28_v25 = vld [vmem:[%s911_s0 + $0x10] sm:$0xff] }
   0x9   :  { %55 = vperm.xlu0 %637, %v46_v7   ;;  %228 = vperm.xlu1 %638, %v215_v8   ;;  %v27_v26 = vld [vmem:[%s911_s0 + $0x8] sm:$0xff]  ;;  %v26_v27 = vld [vmem:[%s911_s0] sm:$0xff]  ;;  %v44_v30 = vld [vmem:[%s915_s1 + $0x10] sm:$0xff] }
   0xa   :  { %571 = vmatpush3.xpose.msk.msra.mxu0 %vm63_vm0, %v39_v4  ;;  %v42_v28 = vld [vmem:[%s915_s1] sm:$0xff]  ;;  %v43_v29 = vld [vmem:[%s915_s1 + $0x8] sm:$0xff]  ;;  %v212_v51 = vld [vmem:[%s916_s3 + $0x10] sm:$0xff] }
   0xb   :  { %572 = vmatprep.subr.mxu0 %v639_v0  ;;  %v210_v48 = vld [vmem:[%s916_s3] sm:$0xff]  ;;  %v211_v50 = vld [vmem:[%s916_s3 + $0x8] sm:$0xff]  ;;  %v332_v8 = vld [vmem:[%s917_s5 + $0x10] sm:$0xff] }
   0xc   :  { %v330_v52 = vld [vmem:[%s917_s5] sm:$0xff]  ;;  %v331_v7 = vld [vmem:[%s917_s5 + $0x8] sm:$0xff] }
   0xd   :  { %223 = vperm.xlu0 %637, %v214_v10   ;;  %218 = vperm.xlu1 %638, %v213_v11  }
   0xe   :  { %573 = vmatpush3.xpose.msk.msra.mxu0 %vm63_vm0, %v38_v9  ;;  %v333_v9 = vld [vmem:[%s917_s5 + $0x18] sm:$0xff] }
   0xf   :  { %574 = vmatprep.subr.mxu0 %v639_v0 }
  0x11   :  { %340 = vperm.xlu0 %637, %v334_v13   ;;  %345 = vperm.xlu1 %638, %v335_v14  }
  0x12   :  { %575 = vmatpush3.xpose.msk.msra.mxu0 %vm63_vm0, %v37_v12 }
  0x13   :  { %576 = vmatprep.subr.mxu0 %v639_v0 }
  0x15   :  { %350 = vperm.xlu0 %637, %v336_v16   ;;  %355 = vperm.xlu1 %638, %v337_v17  }
  0x16   :  { %577 = vmatpush3.xpose.msk.msra.mxu0 %vm63_vm0, %v36_v15 }
  0x17   :  { %578 = vmatprep.subr.mxu0 %v639_v0 }
  0x1a   :  { %579 = vmatpush3.xpose.msk.msra.mxu0 %vm63_vm0, %v35_v18 }
  0x1b   :  { %580 = vmatprep.subr.mxu0 %v639_v0 }
  0x1e   :  { %581 = vmatpush3.xpose.msk.msra.mxu0 %vm63_vm0, %v34_v19 }
  0x1f   :  { %582 = vmatprep.subr.mxu0 %v639_v0 }
  0x22   :  { %583 = vmatpush3.xpose.msk.msra.mxu0 %vm63_vm0, %v33_v20 }
  0x23   :  { %584 = vmatprep.subr.mxu0 %v639_v0 }
  0x26   :  { %585 = vmatpush3.xpose.msk.msra.mxu0 %vm63_vm0, %v32_v21 }
  0x27   :  { %586 = vmatprep.subr.mxu0 %v639_v0 }
  0x2a   :  { %587 = vmatpush3.xpose.msk.msra.mxu0 %vm63_vm0, %v31_v22 }
  0x2b   :  { %588 = vmatprep.subr.mxu0 %v639_v0 }
  0x2e   :  { %589 = vmatpush3.xpose.msk.msra.mxu0 %vm63_vm0, %v30_v23 }
  0x2f   :  { %590 = vmatprep.subr.mxu0 %v639_v0 }
  0x32   :  { %591 = vmatpush3.xpose.msk.msra.mxu0 %vm63_vm0, %v29_v24 }
  0x33   :  { %592 = vmatprep.subr.mxu0 %v639_v0 }
  0x36   :  { %593 = vmatpush3.xpose.msk.msra.mxu0 %vm63_vm0, %v28_v25 }
  0x37   :  { %594 = vmatprep.subr.mxu0 %v639_v0 }
  0x3a   :  { %595 = vmatpush3.xpose.msk.msra.mxu0 %vm63_vm0, %v27_v26 }
  0x3b   :  { %596 = vmatprep.subr.mxu0 %v639_v0 }
  0x3e   :  { %597 = vmatpush3.xpose.msk.msra.mxu0 %vm63_vm0, %v26_v27 }
  0x41   :  { %599 = vmatmul.mubr.msk.f32.vlgmr.msra.gmra.mxu0 %vm63_vm0, %v42_v28 }
  0x42   :  { %601 = vmatprep.mubr.msk.f32.mxu0 %vm640_vm1, %v639_v0 }
  0x45   :  { %602 = vmatmul.mubr.msk.f32.gmra.mxu0 %vm63_vm0, %v43_v29 }
  0x46   :  { %604 = vmatprep.mubr.msk.f32.mxu0 %vm640_vm1, %v639_v0 }
  0x49   :  { %605 = vmatmul.mubr.msk.f32.gmra.mxu0 %vm63_vm0, %v44_v30 }
  0x80   :  { %v61_v31 = vpop.permute.xlu0 %60  ;;  %v51_v38 = vpop.permute.xlu1 %50 }
  0x84   :  { %v56_v35 = vpop.permute.xlu0 %55  ;;  %v229_v54 = vpop.permute.xlu1 %228 }
  0x88   :  { %v224_v57 = vpop.permute.xlu0 %223  ;;  %v219_v60 = vpop.permute.xlu1 %218 }
  0x8c   :  { %v341_v11 = vpop.permute.xlu0 %340  ;;  %v346_v15 = vpop.permute.xlu1 %345 }
  0x90   :  { %v351_v18 = vpop.permute.xlu0 %350  ;;  %v356_v20 = vpop.permute.xlu1 %355 }
 0x101   :  { %v187_v32 = vpop.f32.mrf.mxu0 }
 0x102   :  { %v188_v40 = vadd.f32 %v187_v32, %v51_v38 }
 0x103   :  { %v600_v33 = vpop.f32.mrf.mxu0 }
 0x104   :  { %v204_v45 = vmul.f32 0.01, %v188_v40  ;;  %vm201_vm4 = vcmp.gt.f32.partialorder %v188_v40, 0.0 }
 0x105   :  { %v192_v34 = vpop.f32.mrf.mxu0 }
 0x106   :  { %v193_v37 = vadd.f32 %v192_v34, %v56_v35  ;;  %v207_v49 = vsel %vm201_vm4, %v188_v40, %v204_v45 }
 0x107   :  { %v603_v36 = vpop.f32.mrf.mxu0 }
 0x108   :  { %v205_v43 = vmul.f32 0.01, %v193_v37  ;;  %vm202_vm3 = vcmp.gt.f32.partialorder %v193_v37, 0.0 }
 0x109   :  { %v197_v39 = vpop.f32.mrf.mxu0 }
 0x10a   :  { %v198_v41 = vadd.f32 %v197_v39, %v61_v31  ;;  %v208_v47 = vsel %vm202_vm3, %v193_v37, %v205_v43 }
 0x10b   :  { %v606_v42 = vpop.f32.mrf.mxu0 }
 0x10c   :  { %vm203_vm2 = vcmp.gt.f32.partialorder %v198_v41, 0.0  ;;  %v206_v44 = vmul.f32 0.01, %v198_v41 }
 0x10e   :  { %v209_v46 = vsel %vm203_vm2, %v198_v41, %v206_v44 }
 0x10f   :  { %608 = vmatpush3.msra.mxu1 %v209_v46 }
 0x110   :  { %609 = vmatprep.subr.mxu1 %v639_v0 }
 0x111   :  { %610 = vmatpush3.msra.mxu1 %v208_v47 }
 0x112   :  { %611 = vmatprep.subr.mxu1 %v639_v0 }
 0x113   :  { %612 = vmatpush3.msra.mxu1 %v207_v49 }
 0x114   :  { %614 = vmatmul.mubr.msk.f32.vlgmr.msra.gmra.mxu1 %vm231_vm5, %v210_v48 }
 0x115   :  { %616 = vmatprep.mubr.msk.f32.mxu1 %vm640_vm1, %v639_v0 }
 0x118   :  { %617 = vmatmul.mubr.msk.f32.gmra.mxu1 %vm231_vm5, %v211_v50 }
 0x119   :  { %619 = vmatprep.mubr.msk.f32.mxu1 %vm640_vm1, %v639_v0 }
 0x11c   :  { %620 = vmatmul.mubr.msk.f32.gmra.mxu1 %vm231_vm5, %v212_v51 }
 0x11d   :  { %628 = vmatprep.mubr.msk.f32.mxu1 %vm231_vm5, %v330_v52 }
 0x1d4   :  { %v307_v53 = vpop.f32.mrf.mxu1 }
 0x1d5   :  { %v308_v62 = vadd.f32 %v307_v53, %v219_v60 }
 0x1d6   :  { %v615_v55 = vpop.f32.mrf.mxu1 }
 0x1d7   :  { %v324_v3 = vmul.f32 0.01, %v308_v62  ;;  %vm321_vm8 = vcmp.gt.f32.partialorder %v308_v62, 0.0 }
 0x1d8   :  { %v312_v56 = vpop.f32.mrf.mxu1 }
 0x1d9   :  { %v313_v59 = vadd.f32 %v312_v56, %v224_v57  ;;  %v327_v6 = vsel %vm321_vm8, %v308_v62, %v324_v3 }
 0x1da   :  { %v618_v58 = vpop.f32.mrf.mxu1 }
 0x1db   :  { %v325_v1 = vmul.f32 0.01, %v313_v59  ;;  %vm322_vm7 = vcmp.gt.f32.partialorder %v313_v59, 0.0 }
 0x1dc   :  { %v317_v61 = vpop.f32.mrf.mxu1 }
 0x1dd   :  { %v318_v63 = vadd.f32 %v317_v61, %v229_v54  ;;  %v328_v5 = vsel %vm322_vm7, %v313_v59, %v325_v1 }
 0x1de   :  { %v621_v0 = vpop.f32.mrf.mxu1 }
 0x1df   :  { %v326_v2 = vmul.f32 0.01, %v318_v63  ;;  %vm323_vm6 = vcmp.gt.f32.partialorder %v318_v63, 0.0 }
 0x1e1   :  { %v329_v4 = vsel %vm323_vm6, %v318_v63, %v326_v2 }
 0x1e2   :  { %622 = vmatprep.subr.mxu1 %v329_v4 }
 0x1e3   :  { %623 = vmatpush3.msra.mxu1 %v329_v4 }
 0x1e4   :  { %624 = vmatprep.subr.mxu1 %v328_v5 }
 0x1e5   :  { %625 = vmatpush3.msra.mxu1 %v328_v5 }
 0x1e6   :  { %626 = vmatprep.subr.mxu1 %v327_v6 }
 0x1e7   :  { %627 = vmatpush3.msra.mxu1 %v327_v6 }
 0x1e8   :  { %629 = vmatmul.mubr.msk.f32.vlgmr.msra.gmra.mxu1 %vm231_vm5, %v331_v7 }
 0x1e9   :  { %631 = vmatprep.mubr.msk.f32.mxu1 %vm231_vm5, %v332_v8 }
 0x1ec   :  { %632 = vmatmul.mubr.msk.f32.gmra.mxu1 %vm231_vm5, %v333_v9 }
 0x2a8   :  { %v630_v10 = vpop.f32.mrf.mxu1 }
 0x2a9   :  { %v442_v16 = vadd.f32 %v630_v10, %v346_v15 }
 0x2aa   :  { %v436_v12 = vpop.f32.mrf.mxu1 }
 0x2ab   :  { %v437_v13 = vadd.f32 %v436_v12, %v341_v11 }
 0x2ac   :  { %v633_v14 = vpop.f32.mrf.mxu1 }
 0x2ad   :  { %455 = vxpose.xlu0.b32.start [1/4] (short) %v437_v13, 128  ;;  %v452_v21 = vadd.f32 %v633_v14, %v356_v20 }
 0x2ae   :  { %v446_v17 = vpop.f32.mrf.mxu1 }
 0x2af   :  { %v447_v19 = vadd.f32 %v446_v17, %v351_v18 }
 0x2b1   :  { %456 = vxpose.xlu0.b32.cont [2/4] (short) %v442_v16, 128 }
 0x2b5   :  { %457 = vxpose.xlu0.b32.cont [3/4] (short) %v447_v19, 128 }
 0x2b9   :  { %458 = vxpose.xlu0.b32.end [4/4] (short) %v452_v21, 128 }
 0x329   :  { %v471_v22 = vpop.trf.xlu0 }
 0x32a   :  { %488 = vst.msk [vmem:[%s918_s7] sm:$0xff] %vm487_vm9, %v471_v22 }
 0x32d   :  { %v472_v23 = vpop.trf.xlu0 }
 0x32e   :  { %489 = vst.msk [vmem:[%s918_s7 + $0x8] sm:$0xff] %vm487_vm9, %v472_v23 }
 0x331   :  { %v473_v24 = vpop.trf.xlu0 }
 0x332   :  { %490 = vst.msk [vmem:[%s918_s7 + $0x10] sm:$0xff] %vm487_vm9, %v473_v24 }
 0x335   :  { %v474_v25 = vpop.trf.xlu0 }
 0x336   :  { %491 = vst.msk [vmem:[%s918_s7 + $0x18] sm:$0xff] %vm487_vm9, %v474_v25 }
 0x339   :  { %v475_v26 = vpop.trf.xlu0 }
 0x33a   :  { %492 = vst.msk [vmem:[%s918_s7 + $0x20] sm:$0xff] %vm487_vm9, %v475_v26 }
 0x33d   :  { %v476_v27 = vpop.trf.xlu0 }
 0x33e   :  { %493 = vst.msk [vmem:[%s918_s7 + $0x28] sm:$0xff] %vm487_vm9, %v476_v27 }
 0x341   :  { %v477_v28 = vpop.trf.xlu0 }
 0x342   :  { %494 = vst.msk [vmem:[%s918_s7 + $0x30] sm:$0xff] %vm487_vm9, %v477_v28 }
 0x345   :  { %v478_v29 = vpop.trf.xlu0 }
 0x346   :  { %495 = vst.msk [vmem:[%s918_s7 + $0x38] sm:$0xff] %vm487_vm9, %v478_v29 }
 0x349   :  { %v479_v30 = vpop.trf.xlu0 }
 0x34a   :  { %496 = vst.msk [vmem:[%s918_s7 + $0x40] sm:$0xff] %vm487_vm9, %v479_v30 }
 0x34d   :  { %v480_v31 = vpop.trf.xlu0 }
 0x34e   :  { %497 = vst.msk [vmem:[%s918_s7 + $0x48] sm:$0xff] %vm487_vm9, %v480_v31 }
 0x351   :  { %v481_v32 = vpop.trf.xlu0 }
 0x352   :  { %498 = vst.msk [vmem:[%s918_s7 + $0x50] sm:$0xff] %vm487_vm9, %v481_v32 }
 0x355   :  { %v482_v33 = vpop.trf.xlu0 }
 0x356   :  { %499 = vst.msk [vmem:[%s918_s7 + $0x58] sm:$0xff] %vm487_vm9, %v482_v33 }
 0x359   :  { %v483_v34 = vpop.trf.xlu0 }
 0x35a   :  { %500 = vst.msk [vmem:[%s918_s7 + $0x60] sm:$0xff] %vm487_vm9, %v483_v34 }
 0x35d   :  { %v484_v35 = vpop.trf.xlu0 }
 0x35e   :  { %501 = vst.msk [vmem:[%s918_s7 + $0x68] sm:$0xff] %vm487_vm9, %v484_v35 }
 0x361   :  { %v485_v36 = vpop.trf.xlu0 }
 0x362   :  { %502 = vst.msk [vmem:[%s918_s7 + $0x70] sm:$0xff] %vm487_vm9, %v485_v36 }
 0x365   :  { %v486_v37 = vpop.trf.xlu0 }
 0x366   :  { %503 = vst.msk [vmem:[%s918_s7 + $0x78] sm:$0xff] %vm487_vm9, %v486_v37 }

</bundles_post_ra>
